<compile_context>
chip_gen: v7x
topology: tpu7x:2x2x1
jax: 0.10.0
libtpu: 0.0.40
codegen_flags: <defaults>
</compile_context>

<pallas_src>
import functools

import jax
import jax.numpy as jnp
from jax import lax
from jax.experimental import pallas as pl
from jax.experimental.pallas import tpu as pltpu

EPS = 1e-6  # epsilon of batch_cosine_sim


def dynamic_head_kernel(num_heads, mem_wid,
                        hidden_ref, w_ref, b_ref, mem_ref,
                        key_ref, beta_ref, wc_ref):
    bt = hidden_ref.shape[0]            # batch tile
    hid_dim = hidden_ref.shape[-1]
    hk = num_heads * mem_wid            # width of the key projection

    hidden = hidden_ref[...].reshape(bt, hid_dim)    # [Bt, D]
    mem = mem_ref[...]                               # [Bt, M, W]

    # One fused MXU matmul for both projections: [Bt, D] @ [D, H*W + H].
    lin = jnp.dot(hidden, w_ref[...],
                  preferred_element_type=jnp.float32) + b_ref[...]
    key = jnp.tanh(lin[:, :hk])                      # [Bt, H*W]
    beta = jax.nn.softplus(lin[:, hk:])              # [Bt, H]

    key3 = key.reshape(bt, num_heads, mem_wid)       # [Bt, H, W]
    key_ref[...] = key3                              # single full-block store
    beta_ref[...] = beta[..., None]                  # [Bt, H, 1]

    # Cosine similarity for all heads at once (batched MXU contraction).
    num = jnp.einsum('bhw,bmw->bhm', key3, mem,
                     preferred_element_type=jnp.float32)            # [Bt, H, M]
    key_norm2 = jnp.sum(key3 * key3, axis=-1, keepdims=True) + EPS  # [Bt, H, 1]
    mem_norm2 = jnp.sum(mem * mem, axis=-1) + EPS                   # [Bt, M]
    # rsqrt on the EUP; folds the (numerically negligible) post-sqrt epsilon
    # of the reference `num / (sqrt(...) + eps)` formulation.
    k = num * lax.rsqrt(key_norm2 * mem_norm2[:, None, :])          # [Bt, H, M]

    # beta-sharpened softmax over mem_hei
    wc = k * beta[..., None]
    wc = wc - jnp.max(wc, axis=-1, keepdims=True)
    e = jnp.exp(wc)
    wc_ref[...] = e * pl.reciprocal(
        jnp.sum(e, axis=-1, keepdims=True), approx=True)            # EUP recip


def dynamic_head(hidden, memory, wk, bk, wb, bb, num_heads, mem_wid,
                 *, batch_tile=1):
    B, D = hidden.shape
    _, M, W = memory.shape
    H = num_heads
    assert W == mem_wid
    assert B % batch_tile == 0
    bt = batch_tile
    hc = H * W + H

    # Fuse the two tiny projections into a single weight / bias.
    w_cat = jnp.concatenate([wk, wb], axis=1)        # [D, H*W + H]
    b_cat = jnp.concatenate([bk, bb], axis=1)        # [1, H*W + H]
    # Keep batch as a leading (non-tiled-constrained) axis: [B, 1, D].
    hidden3 = hidden[:, None, :]

    kernel = functools.partial(dynamic_head_kernel, H, W)

    grid_spec = pltpu.PrefetchScalarGridSpec(
        num_scalar_prefetch=0,
        grid=(B // bt,),
        in_specs=[
            pl.BlockSpec((bt, 1, D), lambda b: (b, 0, 0)),   # hidden
            pl.BlockSpec((D, hc), lambda b: (0, 0)),         # fused weight
            pl.BlockSpec((1, hc), lambda b: (0, 0)),         # fused bias
            pl.BlockSpec((bt, M, W), lambda b: (b, 0, 0)),   # memory
        ],
        out_specs=(
            pl.BlockSpec((bt, H, W), lambda b: (b, 0, 0)),   # key
            pl.BlockSpec((bt, H, 1), lambda b: (b, 0, 0)),   # beta
            pl.BlockSpec((bt, H, M), lambda b: (b, 0, 0)),   # wc
        ),
    )

    key_vb, beta_vb, wc_vb = pl.pallas_call(
        kernel,
        out_shape=(jax.ShapeDtypeStruct((B, H, W), jnp.float32),
                   jax.ShapeDtypeStruct((B, H, 1), jnp.float32),
                   jax.ShapeDtypeStruct((B, H, M), jnp.float32)),
        grid_spec=grid_spec,
        compiler_params=pltpu.CompilerParams(
            dimension_semantics=("parallel",)),
    )(hidden3, w_cat, b_cat, memory)

    return key_vb, beta_vb, wc_vb


if __name__ == "__main__":
    # batch=2, hidden_dim=32, num_heads=4, mem_hei=8, mem_wid=16
    B, D, H, M, W = 2, 32, 4, 8, 16

    root = jax.random.PRNGKey(0)
    ks = jax.random.split(root, 6)
    bound = 1.0 / jnp.sqrt(jnp.float32(D))   # torch nn.Linear default init range
    wk = jax.random.uniform(ks[0], (D, H * W), jnp.float32, -bound, bound)
    bk = jax.random.uniform(ks[1], (1, H * W), jnp.float32, -bound, bound)
    wb = jax.random.uniform(ks[2], (D, H), jnp.float32, -bound, bound)
    bb = jax.random.uniform(ks[3], (1, H), jnp.float32, -bound, bound)
    hidden = jax.random.normal(ks[4], (B, D), jnp.float32)
    memory = jax.random.normal(ks[5], (B, M, W), jnp.float32)

    key_vb, beta_vb, wc_vb = dynamic_head(hidden, memory, wk, bk, wb, bb, H, W)
    jax.block_until_ready(wc_vb)

    # pure-JAX reference check (mirrors the PyTorch module exactly)
    key_r = jnp.tanh(hidden @ wk + bk).reshape(B, H, W)
    beta_r = jax.nn.softplus(hidden @ wb + bb).reshape(B, H, 1)
    num = jnp.einsum('bhw,bmw->bhm', key_r, memory)
    den = jnp.sqrt((jnp.sum(key_r ** 2, -1, keepdims=True) + EPS) *
                   (jnp.sum(memory ** 2, -1) + EPS)[:, None, :])
    K = num / (den + EPS)
    wc_r = jax.nn.softmax(K * beta_r, axis=-1)

    assert jnp.allclose(key_vb, key_r, atol=1e-5), "key mismatch"
    assert jnp.allclose(beta_vb, beta_r, atol=1e-5), "beta mismatch"
    # wc tolerance relaxed: EUP rsqrt + approximate reciprocal (~1e-3 rel max).
    assert jnp.allclose(wc_vb, wc_r, atol=2e-3), "wc mismatch"
    print("KERNEL_OK")
</pallas_src>

<mosaic_0001>
module attributes {stable_mosaic.version = 11 : i64} {
  func.func @dynamic_head_kernel(%arg0: i32, %arg1: memref<1x1x32xf32, #tpu.memory_space<vmem>>, %arg2: memref<32x68xf32, #tpu.memory_space<vmem>>, %arg3: memref<1x68xf32, #tpu.memory_space<vmem>>, %arg4: memref<1x8x16xf32, #tpu.memory_space<vmem>>, %arg5: memref<1x4x16xf32, #tpu.memory_space<vmem>>, %arg6: memref<1x4x1xf32, #tpu.memory_space<vmem>>, %arg7: memref<1x4x8xf32, #tpu.memory_space<vmem>>) attributes {dimension_semantics = [#tpu.dimension_semantics<parallel>], iteration_bounds = array<i64: 2>, scalar_prefetch = 0 : i64, scratch_operands = 0 : i64, tpu.core_type = #tpu.core_type<tc>, window_params = [{transform_indices = @transform_0, window_bounds = array<i64: 1, 1, 32>}, {pipeline_mode = #tpu.pipeline_mode<synchronous>, transform_indices = @transform_1, window_bounds = array<i64: 32, 68>}, {pipeline_mode = #tpu.pipeline_mode<synchronous>, transform_indices = @transform_2, window_bounds = array<i64: 1, 68>}, {transform_indices = @transform_3, window_bounds = array<i64: 1, 8, 16>}, {transform_indices = @transform_4, window_bounds = array<i64: 1, 4, 16>}, {transform_indices = @transform_5, window_bounds = array<i64: 1, 4, 1>}, {transform_indices = @transform_6, window_bounds = array<i64: 1, 4, 8>}]} {
    %c0 = arith.constant 0 : index
    %c0_0 = arith.constant 0 : index
    %c0_1 = arith.constant 0 : index
    %0 = vector.load %arg1[%c0, %c0_0, %c0_1] : memref<1x1x32xf32, #tpu.memory_space<vmem>>, vector<1x1x32xf32>
    %1 = vector.shape_cast %0 : vector<1x1x32xf32> to vector<1x32xf32>
    %c0_2 = arith.constant 0 : index
    %c0_3 = arith.constant 0 : index
    %c0_4 = arith.constant 0 : index
    %2 = vector.load %arg4[%c0_2, %c0_3, %c0_4] : memref<1x8x16xf32, #tpu.memory_space<vmem>>, vector<1x8x16xf32>
    %c0_5 = arith.constant 0 : index
    %c0_6 = arith.constant 0 : index
    %3 = vector.load %arg2[%c0_5, %c0_6] : memref<32x68xf32, #tpu.memory_space<vmem>>, vector<32x68xf32>
    %cst = arith.constant dense<0.000000e+00> : vector<1x68xf32>
    %4 = tpu.matmul %1, %3, %cst {dimension_numbers = #tpu.dot_dimension_numbers<[1], [0], [0], [1], [0, 0, 1, 1], [], []>} : vector<1x32xf32>, vector<32x68xf32>, vector<1x68xf32> -> vector<1x68xf32>
    %c0_7 = arith.constant 0 : index
    %c0_8 = arith.constant 0 : index
    %5 = vector.load %arg3[%c0_7, %c0_8] : memref<1x68xf32, #tpu.memory_space<vmem>>, vector<1x68xf32>
    %6 = arith.addf %4, %5 : vector<1x68xf32>
    %7 = vector.extract_strided_slice %6 {offsets = [0, 0], sizes = [1, 64], strides = [1, 1]} : vector<1x68xf32> to vector<1x64xf32>
    %8 = math.tanh %7 : vector<1x64xf32>
    %9 = vector.extract_strided_slice %6 {offsets = [0, 64], sizes = [1, 4], strides = [1, 1]} : vector<1x68xf32> to vector<1x4xf32>
    %cst_9 = arith.constant 0.000000e+00 : f32
    %10 = vector.broadcast %cst_9 : f32 to vector<1x4xf32>
    %11 = arith.maximumf %9, %10 : vector<1x4xf32>
    %12 = vector.broadcast %cst_9 : f32 to vector<1x4xf32>
    %13 = arith.subf %9, %12 : vector<1x4xf32>
    %14 = arith.cmpf one, %13, %13 : vector<1x4xf32>
    %15 = vector.broadcast %cst_9 : f32 to vector<1x4xf32>
    %16 = arith.addf %9, %15 : vector<1x4xf32>
    %17 = math.absf %13 : vector<1x4xf32>
    %cst_10 = arith.constant 0.000000e+00 : f32
    %18 = vector.broadcast %cst_10 : f32 to vector<1x4xf32>
    %19 = arith.subf %18, %17 : vector<1x4xf32>
    %20 = math.exp %19 : vector<1x4xf32>
    %21 = math.log1p %20 : vector<1x4xf32>
    %22 = arith.addf %11, %21 : vector<1x4xf32>
    %23 = arith.select %14, %16, %22 : vector<1x4xi1>, vector<1x4xf32>
    %24 = vector.shape_cast %8 : vector<1x64xf32> to vector<1x4x16xf32>
    %c0_11 = arith.constant 0 : index
    %c0_12 = arith.constant 0 : index
    %c0_13 = arith.constant 0 : index
    %25 = vector.load %arg5[%c0_11, %c0_12, %c0_13] : memref<1x4x16xf32, #tpu.memory_space<vmem>>, vector<1x4x16xf32>
    tpu.vector_store %arg5[%c0_11, %c0_12, %c0_13], %24 {strides = array<i32>} : memref<1x4x16xf32, #tpu.memory_space<vmem>>, vector<1x4x16xf32>,
    %26 = vector.shape_cast %23 : vector<1x4xf32> to vector<1x4x1xf32>
    %c0_14 = arith.constant 0 : index
    %c0_15 = arith.constant 0 : index
    %c0_16 = arith.constant 0 : index
    %27 = vector.load %arg6[%c0_14, %c0_15, %c0_16] : memref<1x4x1xf32, #tpu.memory_space<vmem>>, vector<1x4x1xf32>
    tpu.vector_store %arg6[%c0_14, %c0_15, %c0_16], %26 {strides = array<i32>} : memref<1x4x1xf32, #tpu.memory_space<vmem>>, vector<1x4x1xf32>,
    "tpu.trace_start"() <{level = 10 : i32, message = "bhw,bmw->bhm"}> : () -> ()
    %cst_17 = arith.constant dense<0.000000e+00> : vector<1x4x8xf32>
    %28 = tpu.matmul %24, %2, %cst_17 {dimension_numbers = #tpu.dot_dimension_numbers<[2], [2], [1], [1], [0, 0, 0, 1, 1, 1], [0], [0]>} : vector<1x4x16xf32>, vector<1x8x16xf32>, vector<1x4x8xf32> -> vector<1x4x8xf32>
    "tpu.trace_stop"() : () -> ()
    %29 = arith.mulf %24, %24 : vector<1x4x16xf32>
    %cst_18 = arith.constant dense<0.000000e+00> : vector<1x4xf32>
    %30 = vector.multi_reduction <add>, %29, %cst_18 [2] : vector<1x4x16xf32> to vector<1x4xf32>
    %31 = vector.shape_cast %30 : vector<1x4xf32> to vector<1x4x1xf32>
    %cst_19 = arith.constant 9.99999997E-7 : f32
    %32 = vector.broadcast %cst_19 : f32 to vector<1x4x1xf32>
    %33 = arith.addf %31, %32 : vector<1x4x1xf32>
    %34 = arith.mulf %2, %2 : vector<1x8x16xf32>
    %cst_20 = arith.constant dense<0.000000e+00> : vector<1x8xf32>
    %35 = vector.multi_reduction <add>, %34, %cst_20 [2] : vector<1x8x16xf32> to vector<1x8xf32>
    %cst_21 = arith.constant 9.99999997E-7 : f32
    %36 = vector.broadcast %cst_21 : f32 to vector<1x8xf32>
    %37 = arith.addf %35, %36 : vector<1x8xf32>
    %38 = vector.shape_cast %37 : vector<1x8xf32> to vector<1x1x8xf32>
    %39 = vector.broadcast %33 : vector<1x4x1xf32> to vector<1x4x8xf32>
    %40 = vector.broadcast %38 : vector<1x1x8xf32> to vector<1x4x8xf32>
    %41 = arith.mulf %39, %40 : vector<1x4x8xf32>
    %42 = math.rsqrt %41 : vector<1x4x8xf32>
    %43 = arith.mulf %28, %42 : vector<1x4x8xf32>
    %44 = vector.shape_cast %23 : vector<1x4xf32> to vector<1x4x1xf32>
    %45 = vector.broadcast %44 : vector<1x4x1xf32> to vector<1x4x8xf32>
    %46 = arith.mulf %43, %45 : vector<1x4x8xf32>
    %cst_22 = arith.constant dense<0xFF800000> : vector<1x4xf32>
    %47 = vector.multi_reduction <maximumf>, %46, %cst_22 [2] : vector<1x4x8xf32> to vector<1x4xf32>
    %48 = vector.shape_cast %47 : vector<1x4xf32> to vector<1x4x1xf32>
    %49 = vector.broadcast %48 : vector<1x4x1xf32> to vector<1x4x8xf32>
    %50 = arith.subf %46, %49 : vector<1x4x8xf32>
    %51 = math.exp %50 : vector<1x4x8xf32>
    %cst_23 = arith.constant dense<0.000000e+00> : vector<1x4xf32>
    %52 = vector.multi_reduction <add>, %51, %cst_23 [2] : vector<1x4x8xf32> to vector<1x4xf32>
    %53 = vector.shape_cast %52 : vector<1x4xf32> to vector<1x4x1xf32>
    %54 = tpu.reciprocal %53 {approx = true} : vector<1x4x1xf32> -> vector<1x4x1xf32>
    %55 = vector.broadcast %54 : vector<1x4x1xf32> to vector<1x4x8xf32>
    %56 = arith.mulf %51, %55 : vector<1x4x8xf32>
    %c0_24 = arith.constant 0 : index
    %c0_25 = arith.constant 0 : index
    %c0_26 = arith.constant 0 : index
    %57 = vector.load %arg7[%c0_24, %c0_25, %c0_26] : memref<1x4x8xf32, #tpu.memory_space<vmem>>, vector<1x4x8xf32>
    tpu.vector_store %arg7[%c0_24, %c0_25, %c0_26], %56 {strides = array<i32>} : memref<1x4x8xf32, #tpu.memory_space<vmem>>, vector<1x4x8xf32>,
    return
  }
  func.func @transform_0(%arg0: i32) -> (i32, i32, i32) {
    %c0_i32 = arith.constant 0 : i32
    %c0_i32_0 = arith.constant 0 : i32
    %c0_i32_1 = arith.constant 0 : i32
    return %arg0, %c0_i32, %c0_i32_0 : i32, i32, i32
  }
  func.func @transform_1(%arg0: i32) -> (i32, i32) {
    %c0_i32 = arith.constant 0 : i32
    %c0_i32_0 = arith.constant 0 : i32
    %c0_i32_1 = arith.constant 0 : i32
    return %c0_i32, %c0_i32_0 : i32, i32
  }
  func.func @transform_2(%arg0: i32) -> (i32, i32) {
    %c0_i32 = arith.constant 0 : i32
    %c0_i32_0 = arith.constant 0 : i32
    %c0_i32_1 = arith.constant 0 : i32
    return %c0_i32, %c0_i32_0 : i32, i32
  }
  func.func @transform_3(%arg0: i32) -> (i32, i32, i32) {
    %c0_i32 = arith.constant 0 : i32
    %c0_i32_0 = arith.constant 0 : i32
    %c0_i32_1 = arith.constant 0 : i32
    return %arg0, %c0_i32, %c0_i32_0 : i32, i32, i32
  }
  func.func @transform_4(%arg0: i32) -> (i32, i32, i32) {
    %c0_i32 = arith.constant 0 : i32
    %c0_i32_0 = arith.constant 0 : i32
    %c0_i32_1 = arith.constant 0 : i32
    return %arg0, %c0_i32, %c0_i32_0 : i32, i32, i32
  }
  func.func @transform_5(%arg0: i32) -> (i32, i32, i32) {
    %c0_i32 = arith.constant 0 : i32
    %c0_i32_0 = arith.constant 0 : i32
    %c0_i32_1 = arith.constant 0 : i32
    return %arg0, %c0_i32, %c0_i32_0 : i32, i32, i32
  }
  func.func @transform_6(%arg0: i32) -> (i32, i32, i32) {
    %c0_i32 = arith.constant 0 : i32
    %c0_i32_0 = arith.constant 0 : i32
    %c0_i32_1 = arith.constant 0 : i32
    return %arg0, %c0_i32, %c0_i32_0 : i32, i32, i32
  }
}

</mosaic_0001>

<bundles_post_ra>
// kernel: tpu_custom_call.1
= control target key start
LH: loop header
LB: loop body
LE: loop exit
PB: predicated region body
PF: predicated region fallthrough
CT: control target
= control target key end

     0   :  { %s1477_s0 = inlined_call_operand.hbm [shape: f32[2,1,32], index: 0, kind: input, shape index: {}]   ;;  %s1478_s1 = inlined_call_operand.hbm [shape: f32[32,68], index: 1, kind: input, shape index: {}]   ;;  %s1479_s2 = inlined_call_operand.vmem [shape: f32[1,68], index: 2, kind: input, shape index: {}]   ;;  %s1480_s3 = inlined_call_operand.hbm [shape: f32[2,8,16], index: 3, kind: input, shape index: {}]   ;;  %s1481_s4 = inlined_call_operand.hbm [shape: f32[2,4,16], index: 4, kind: output, shape index: {0}]   ;;  %s1482_s5 = inlined_call_operand.vmem [shape: f32[2,4,1], index: 5, kind: output, shape index: {1}]   ;;  %s1483_s6 = inlined_call_operand.hbm [shape: f32[2,4,8], index: 6, kind: output, shape index: {2}]  }
   0x1   :  { %1492 = sst [smem:[#allocation18_spill]] %s1477_s0 }
   0x2   :  { %12 = vsyncpa [#allocation3], 0 }
   0x3   :  { %14 = vsyncpa [#allocation3 + $0x1], 0 }
   0x4   :  { %15 = vsyncpa [#allocation6], 0 }
   0x5   :  { %16 = vsyncpa [#allocation4], 0 }
   0x6   :  { %18 = vsyncpa [#allocation4 + $0x1], 0 }
   0x7   :  { %19 = vsyncpa [#allocation10], 0 }
   0x8   :  { %21 = vsyncpa [#allocation10 + $0x1], 0  ;;  %s1174_s21 = smov 0   ;;  %s1176_s22 = smov 0  }
   0x9   :  { %s1178_s23 = smov 0   ;;  %s1180_s24 = smov 0  }
   0xa LB: > { %1493 = sst [smem:[#allocation16_spill]] %s1118_s23  ;;  %s1195_s25 = sadd.s32 1, %s1122_s24   ;;  %s1122_s24 = sphi %s1180_s24, %s1516_s24   ;;  %s1118_s23 = sphi %s1178_s23, %s1513_s23   ;;  %s1114_s22 = sphi %s1176_s22, %s1515_s22   ;;  %s1110_s21 = sphi %s1174_s21, %s1514_s21  }
   0xb   : > { %s34_s26 = sadd.s32 1, %s1118_s23  ;;  %s31_s27 = ssub.s32 %s1122_s24, %s1195_s25 }
   0xc   : > { %p41_p0 = scmp.ne.s32.totalorder %s1118_s23, %s1114_s22  ;;  %p32_p1 = scmp.eq.s32.totalorder %s31_s27, 0 }
   0xd   : > { %p42_p2 = scmp.eq.s32.totalorder %s1122_s24, 0  ;;  %p870_p4 = scmp.lt.s32.totalorder %s1122_s24, 2 }
   0xe   : > { %s1206_s28 = scalar_select %p32_p1, %s1118_s23, %s34_s26  }
   0xf   : > { %p43_p5 = por %p42_p2, %p41_p0  ;;  %s233_s29 = sand.u32 1, %s1122_s24  }
  0x10   : > { %1494 = sst [smem:[#allocation17_spill]] %s1206_s28  ;;  %s235_s30 = sand.u32 1, %s1118_s23  }
  0x11   : > { %s792_s7 = sshll.u32 %s1122_s24, 4  ;;  %s1495_s0 = sld [smem:[#allocation18_spill]] }
  0x12   : > { %s236_s11 = scalar_lea.vmem [#allocation2], %s235_s30  ;;  %p1223_p6 = pnand %p870_p4, %p43_p5 }
  0x13   : > { %s243_s12 = sshll.u32 %s236_s11, 4  ;;  %s1227_s14 = scalar_lea.sflag [#allocation3], %s233_s29  ;;  %s1221_s12 = int_to_ptr.vmem [resolvable:$true] %s243_s12 }
  0x14   : > { %s1496_s13 = scalar_select %p1223_p6, 1, 0 }
  0x15   : > { %p1486_p8 = pneg %p1223_p6 }
  0x17   : > { %s1217_s10 = scalar_lea.hbm %s1495_s0, %s792_s7  ;;  %s933_s18 = scalar_lea.hbm %s1495_s0, 32 }
  0x18   : > { %s928_s15 = scalar_lea.hbm %s1217_s10, 16  ;;  %p934_p11 = scmp.lt.u32.totalorder %s1217_s10, %s1495_s0 }
  0x19   : > { %p929_p7 = scmp.ne.s32.totalorder %s1217_s10, %s928_s15  ;;  %p935_p12 = scmp.lt.u32.totalorder %s933_s18, %s928_s15 }
  0x1a   : > { %p937_p1 = scmp.lt.u32.totalorder %s928_s15, %s1217_s10 }
  0x1b   : > { %p931_p9 = pnand %p1486_p8, %p929_p7  ;;  %p936_p13 = por %p935_p12, %p934_p11 }
  0x1d   : > { %p932_p10 = pneg %p931_p9  ;;  %p938_p2 = por %p937_p1, %p936_p13 }
  0x1f   : > { %p939_p4 = pnand %p938_p2, %p932_p10 }
  0x21   : > { %942 = shalt.err (!%p939_p4)
}
  0x22   : > { %s943_s26 = scalar_lea.vmem %s1221_s12, 16  ;;  %s1124_s27 = smov [#allocation2]  }
  0x23   : > { %p944_p5 = scmp.ne.s32.totalorder %s1221_s12, %s943_s26  ;;  %s948_s29 = sshll.u32 %s1124_s27, 4  ;;  %s949_s29 = int_to_ptr.vmem [resolvable:$false] %s948_s29 }
  0x24   : > { %s950_s7 = scalar_lea.vmem %s949_s29, 32  ;;  %p951_p3 = scmp.lt.s32.totalorder %s1221_s12, %s949_s29 }
  0x25   : > { %p946_p7 = pnand %p944_p5, %p1486_p8  ;;  %p952_p11 = scmp.lt.s32.totalorder %s950_s7, %s943_s26 }
  0x27   : > { %p947_p9 = pneg %p946_p7  ;;  %p953_p12 = por %p952_p11, %p951_p3 }
  0x29   : > { %p954_p13 = pnand %p953_p12, %p947_p9 }
  0x2b   : > { %957 = shalt.err (!%p954_p13)
}
  0x2c   : > { %858 = dma.hbm_to_vmem [thread:$0]  (!%p1223_p6), %s1217_s10, 16, %s1221_s12, %s1227_s14  }
  0x2d   : > { %s1256_s8 = sadd.s32 4294967295, %s1122_s24   ;;  %s788_s9 = sadd.s32 4294967294, %s1122_s24  }
  0x2e   : > { %p47_p3 = scmp.ne.s32.totalorder %s1114_s22, %s1110_s21  ;;  %p1485_p10 = scmp.eq.s32.totalorder %s1256_s8, 0 }
  0x2f   : > { %p139_p1 = scmp.eq.s32.totalorder %s1256_s8, 1  ;;  %p145_p2 = scmp.eq.s32.totalorder %s788_s9, 1 }
  0x30   : > { %p1265_p4 = por %p1485_p10, %p47_p3  ;;  %p789_p5 = scmp.ge.s32.totalorder %s1122_s24, 1 }
  0x31   : > { %p1273_p7 = por %p139_p1, %p41_p0  ;;  %p1277_p9 = por %p145_p2, %p47_p3 }
  0x32   : > { %s1497_s11 = scalar_select %p1265_p4, 1, 0 }
  0x33   : > { %s1498_s10 = scalar_select %p1273_p7, 1, 0 }
  0x34   : > { %s1499_s12 = scalar_select %p1277_p9, 1, 0 }
  0x35   : > { %p204_p11 = scmp.lt.s32.totalorder %s1122_s24, 3  ;;  %s793_s15 = sshll.u32 %s235_s30, 3 }
  0x36   : > { %s1125_s17 = smov [#allocation5]   ;;  %s794_s19 = sshll.u32 %s1122_s24, 7 }
  0x37   : > { %p1284_p12 = pnand %p789_p5, %p204_p11  ;;  %s216_s18 = sshll.u32 %s1125_s17, 4  ;;  %s1288_s18 = int_to_ptr.vmem [resolvable:$true] %s216_s18 }
  0x38   : > { %s254_s20 = scalar_lea.vmem [#allocation7], %s793_s15  ;;  %s1302_s7 = scalar_lea.hbm %s1480_s3, %s794_s19 }
  0x39   : > { %s1500_s16 = scalar_select %p1284_p12, 1, 0 }
  0x3a   : > { %p851_p0 = pneg %p1284_p12  ;;  %s261_s26 = sshll.u32 %s254_s20, 4  ;;  %s1304_s26 = int_to_ptr.vmem [resolvable:$true] %s261_s26 }
  0x3b   : > { %s958_s0 = scalar_lea.hbm %s1478_s1, 512 }
  0x3c   : > { %p1295_p13 = pnand %p851_p0, %p1485_p10  ;;  %p959_p3 = scmp.ne.s32.totalorder %s1478_s1, %s958_s0 }
  0x3d   : > { %p965_p11 = scmp.lt.u32.totalorder %s958_s0, %s1478_s1 }
  0x3e   : > { %p960_p1 = pneg %p1295_p13 }
  0x40   : > { %p961_p2 = pnand %p960_p1, %p959_p3 }
  0x42   : > { %p962_p5 = pneg %p961_p2 }
  0x44   : > { %p967_p0 = pnand %p965_p11, %p962_p5 }
  0x46   : > { %970 = shalt.err (!%p967_p0)
}
  0x47   : > { %s971_s19 = scalar_lea.vmem %s1288_s18, 512  ;;  %p979_p7 = scmp.lt.s32.totalorder %s1288_s18, %s1288_s18 }
  0x48   : > { %p972_p10 = scmp.ne.s32.totalorder %s1288_s18, %s971_s19  ;;  %p980_p4 = scmp.lt.s32.totalorder %s971_s19, %s971_s19 }
  0x4a   : > { %p974_p8 = pnand %p972_p10, %p960_p1  ;;  %p981_p12 = por %p980_p4, %p979_p7 }
  0x4c   : > { %p975_p9 = pneg %p974_p8 }
  0x4e   : > { %p982_p6 = pnand %p981_p12, %p975_p9 }
  0x50   : > { %985 = shalt.err (!%p982_p6)
}
  0x51   : > { %s1126_s28 = smov 128   ;;  %s1127_s0 = smov 8  }
  0x52   : > { %854 = dma.hbm_to_vmem [thread:$0]  (!%p1295_p13), %s1478_s1, 512, %s1288_s18, [#allocation6], %s1126_s28, %s1126_s28, %s1127_s0  }
  0x53   : > { %s986_s29 = scalar_lea.hbm %s1302_s7, 128  ;;  %p1502_p10 = scmp.ne.s32.totalorder %s1496_s13, 0 }
  0x54   : > { %p987_p8 = scmp.ne.s32.totalorder %s1302_s7, %s986_s29  ;;  %s991_s15 = scalar_lea.hbm %s1480_s3, 256 }
  0x55   : > { %p1503_p4 = pneg %p1502_p10  ;;  %p992_p9 = scmp.lt.u32.totalorder %s1302_s7, %s1480_s3 }
  0x56   : > { %p993_p12 = scmp.lt.u32.totalorder %s991_s15, %s986_s29  ;;  %p995_p1 = scmp.lt.u32.totalorder %s986_s29, %s1302_s7 }
  0x57   : > { %p989_p7 = pnand %p987_p8, %p1503_p4 }
  0x58   : > { %p994_p3 = por %p993_p12, %p992_p9 }
  0x59   : > { %p990_p6 = pneg %p989_p7 }
  0x5a   : > { %p996_p2 = por %p995_p1, %p994_p3 }
  0x5c   : > { %p997_p5 = pnand %p996_p2, %p990_p6 }
  0x5e   : > { %1000 = shalt.err (!%p997_p5)
}
  0x5f   : > { %s1001_s18 = scalar_lea.vmem %s1304_s26, 128  ;;  %p1504_p11 = pmov %p1503_p4 }
  0x60   : > { %p1002_p13 = scmp.ne.s32.totalorder %s1304_s26, %s1001_s18  ;;  %s1128_s27 = smov [#allocation7]  }
  0x61   : > { %s1006_s28 = sshll.u32 %s1128_s27, 4  ;;  %s1007_s28 = int_to_ptr.vmem [resolvable:$false] %s1006_s28 }
  0x62   : > { %p1004_p0 = pnand %p1002_p13, %p1504_p11  ;;  %s1008_s0 = scalar_lea.vmem %s1007_s28, 256 }
  0x63   : > { %p1009_p4 = scmp.lt.s32.totalorder %s1304_s26, %s1007_s28  ;;  %p1010_p7 = scmp.lt.s32.totalorder %s1008_s0, %s1001_s18 }
  0x64   : > { %p1005_p8 = pneg %p1004_p0 }
  0x65   : > { %p1011_p9 = por %p1010_p7, %p1009_p4 }
  0x67   : > { %p1012_p12 = pnand %p1011_p9, %p1005_p8 }
  0x69   : > { %1015 = shalt.err (!%p1012_p12)
}
  0x6a   : > { %861 = dma.hbm_to_vmem [thread:$0]  (!%p1502_p10), %s1302_s7, 128, %s1304_s26, %s1227_s14  }
  0x6b   : > { %p1505_p6 = scmp.ne.s32.totalorder %s1500_s16, 0 }
  0x6c   : > { %s272_s23 = sand.u32 (!%p1505_p6), 1, %s1256_s8   ;;  %s1355_s30 = sand.u32 (!%p1505_p6), 1, %s1114_s22  }
  0x6d   : > { %270 = sbr.rel (%p1505_p6) target bundleno = 1029 (0x405), region = 36  ;;  %s273_s29 = scalar_lea.sflag (!%p1505_p6), [#allocation3], %s272_s23 }
  0x6e   : > { %s275_s9 = scalar_lea.vmem (!%p1505_p6), [#allocation2], %s1355_s30  ;;  %p1506_p3 = scmp.ne.s32.totalorder (!%p1505_p6), %s1497_s11, 0 }
  0x74   : > { %1089 = dma.done.wait (%p1506_p3), %s273_s29, 16  }
  0x75   : > { %1091 = vsyncadd (%p1506_p3), %s273_s29, 4294967280  ;;  %p1507_p1 = scmp.eq.s32.totalorder %s1256_s8, 0 }
  0x77   : > { %1093 = dma.done.wait (%p1507_p1), [#allocation6], 512   ;;  %p1508_p10 = pmov %p1507_p1 }
  0x78   : > { %s797_s13 = sshll.u32 %s1355_s30, 3 }
  0x79   : > { %1095 = vsyncadd (%p1508_p10), [#allocation6], 4294966784  ;;  %s288_s14 = scalar_lea.vmem [#allocation7], %s797_s13 }
  0x7a   : > { %1097 = dma.done.wait (%p1506_p3), %s273_s29, 128  }
  0x7b   : > { %1099 = vsyncadd (%p1506_p3), %s273_s29, 4294967168  ;;  %v1129_v0 = vmov 0.0|0.0   ;;  %vm1130_vm0 = vmmov 0   ;;  %v1131_v1 = vmov 0.0   ;;  %v336_v2 = vld [vmem:[#allocation5] sm:$0xff]  ;;  %v337_v3 = vld [vmem:[#allocation5 + $0x8] sm:$0xff]  ;;  %v448_v22 = vlaneseq }
  0x7c   : > { %833 = vmatprep.subr.bf16.mxu0 %v1129_v0  ;;  %825 = vmatprep.mubr.msk.f32.mxu0 %vm1130_vm0, %v1131_v1  ;;  %v338_v4 = vld [vmem:[#allocation5 + $0x10] sm:$0xff]  ;;  %v834_v5 = vpack.c.bf16 %v337_v3, %v336_v2  ;;  %v339_v6 = vld [vmem:[#allocation5 + $0x18] sm:$0xff]  ;;  %vm341_vm1 = vcmask 261120   ;;  %v335_v13 = vld [vmem:[%s288_s14] sm:$0xff]  ;;  %vm480_vm2 = vcmask 130048   ;;  %s1132_s26 = smov 80  }
  0x7d   : > { %828 = vmatprep.subr.mxu1 %v1131_v1  ;;  %830 = vmatprep.mubr.msk.f32.mxu1 %vm1130_vm0, %v1131_v1  ;;  %v837_v7 = vpack.c.bf16 %v339_v6, %v338_v4  ;;  %v334_v8 = vld [vmem:[%s275_s9] sm:$0x1]  ;;  %s1133_s7 = smov 112   ;;  %s1134_s17 = smov 96   ;;  %v562_v15 = vmul.f32 %v335_v13, %v335_v13  ;;  %v1135_v20 = vmov 1983009808  }
  0x7e   : > { %835 = vmatpush3.bf16.msra.mxu0 %v834_v5  ;;  %v340_v9 = vld [vmem:[%s1479_s2] sm:$0x1]  ;;  %829 = vmatpush3.xpose.msk.msra.mxu1 %vm480_vm2, %v335_v13  ;;  %v446_v21 = vunpack.c.l.s4 %v1135_v20  ;;  %v1136_v24 = vmov 1934713408   ;;  %v449_v28 = vshrl.u32 %v448_v22, 7  ;;  %s798_s15 = sshll.u32 %s1355_s30, 2 }
  0x7f   : > { %836 = vmatprep.subr.bf16.mxu0 %v1129_v0  ;;  %v563_v16 = vsel %vm480_vm2, %v562_v15, 0.0  ;;  %v462_v25 = vunpack.c.l.s4 %v1136_v24  ;;  %vm468_vm3 = vcmask 125952   ;;  %s1384_s20 = scalar_lea.vmem [#allocation8], %s798_s15  ;;  %p330_p2 = scmp.lt.s32.totalorder %s1256_s8, 1  ;;  %vm478_vm6 = vcmask 3072  }
  0x80   : > { %v447_v23 = vunpack.c.0.s8 %v446_v21  ;;  %v472_v52 = vsub.s32 0, %v449_v28  ;;  %v569_v57 = vand.u32 127, %v448_v22  ;;  %vm583_vm7 = vcmask 60416   ;;  %s806_s23 = sshll.u32 %s1256_s8, 6  ;;  %s619_s14 = sshll.u32 %s1384_s20, 4  ;;  %s620_s14 = int_to_ptr.vmem [resolvable:$true] %s619_s14 }
  0x81   : > { %v463_v32 = vunpack.c.0.s8 %v462_v25  ;;  %s331_s19 = scalar_select %p330_p2, %s1256_s8, 1 }
  0x82   : > { %838 = vmatpush3.bf16.msra.mxu0 %v837_v7  ;;  %v450_v30 = vsub.s32 %v447_v23, %v449_v28  ;;  %v572_v59 = vsub.s32 %v569_v57, %v449_v28  ;;  %s1404_s13 = scalar_lea.hbm %s1481_s4, %s806_s23  ;;  %s597_s11 = scalar_lea.sflag [#allocation4], %s1355_s30 }
  0x83   : > { %v466_v37 = vsub.s32 %v463_v32, %v449_v28  ;;  %s800_s18 = sshll.u32 %s331_s19, 2  ;;  %s1016_s16 = scalar_lea.vmem %s620_s14, 64 }
  0x84   : > { %s333_s0 = scalar_lea.vmem %s1482_s5, %s800_s18  ;;  %p1017_p5 = scmp.ne.s32.totalorder %s620_s14, %s1016_s16 }
  0x85   : > { %826 = vmatmul.mubr.msk.f32.vlgmr.msra.gmra.mrb[0].mxu0 %vm341_vm1, %v334_v8  ;;  %p1509_p13 = scmp.ne.s32.totalorder %s1498_s10, 0 }
  0x87   : > { %p1018_p11 = pnand %p1017_p5, %p1509_p13 }
  0x89   : > { %p1019_p0 = pneg %p1018_p11 }
 0x158   : > { %v411_v10 = vpop.f32.mrb[0].mxu0 }
 0x159   : > { %v1374_v11 = vadd.f32 %v411_v10, %v340_v9  ;;  %v827_v12 = vpop.f32.mrb[1].mxu0 }
 0x15b   : > { %916 = vtanh.f32 %v1374_v11  ;;  %v419_v17 = vand.u32 2147483647, %v1374_v11  ;;  %v416_v50 = vmax.f32 %v1374_v11, 0.0  ;;  %vm417_vm5 = vcmp.ne.f32.partialorder %v1374_v11, %v1374_v11 }
 0x15d   : > { %v420_v18 = vsub.f32 0.0, %v419_v17 }
 0x15f   : > { %v421_v19 = vmul.f32 1.442695, %v420_v18 }
 0x161   : > { %918 = vpow2.f32 %v421_v19 }
 0x165   : > { %v917_v14 = vpop.eup %916 }
 0x166   : > { %441 = vrot.lane.b32.xlu1 %v917_v14, %s1132_s26  ;;  %435 = vrot.lane.b32.xlu0 %v917_v14, %s1133_s7  ;;  %s1137_s26 = smov [#allocation8]  }
 0x167   : > { %s1020_s7 = sshll.u32 %s1137_s26, 4  ;;  %s1021_s7 = int_to_ptr.vmem [resolvable:$false] %s1020_s7 }
 0x168   : > { %p1023_p8 = scmp.lt.s32.totalorder %s620_s14, %s1021_s7 }
 0x16a   : > { %438 = vrot.lane.b32.xlu0 %v917_v14, %s1134_s17  ;;  %s1022_s17 = scalar_lea.vmem %s1021_s7, 128 }
 0x16b   : > { %v919_v29 = vpop.eup %918  ;;  %p1024_p4 = scmp.lt.s32.totalorder %s1022_s17, %s1016_s16 }
 0x16c   : > { %v423_v35 = vadd.f32 1.0, %v919_v29  ;;  %v426_v43 = vmul.f32 -0.5, %v919_v29  ;;  %v429_v46 = vand.u32 2147483647, %v919_v29 }
 0x16d   : > { %p1025_p7 = por %p1024_p4, %p1023_p8 }
 0x16e   : > { %920 = vlog2.f32 %v423_v35  ;;  %v427_v45 = vadd.f32 1.0, %v426_v43  ;;  %vm430_vm4 = vcmp.lt.f32.partialorder %v429_v46, 0.0004427343 }
 0x16f   : > { %p1026_p9 = pnand %p1025_p7, %p1019_p0 }
 0x170   : > { %v428_v48 = vmul.f32 %v919_v29, %v427_v45 }
 0x178   : > { %v921_v44 = vpop.eup %920 }
 0x179   : > { %v425_v47 = vmul.f32 0.6931472, %v921_v44 }
 0x17b   : > { %v431_v49 = vsel %vm430_vm4, %v428_v48, %v425_v47 }
 0x17c   : > { %v432_v51 = vadd.f32 %v431_v49, %v416_v50 }
 0x17e   : > { %v433_v53 = vsel %vm417_vm5, %v1374_v11, %v432_v51 }
 0x17f   : > { %v473_v54 = vrot.slane %v433_v53, %v472_v52 }
 0x18a   : > { %564 = vadd.xlane.f32.xlu1 %v563_v16 }
 0x1d8   : > { %v442_v26 = vpop.permute.xlu1 %441  ;;  %v436_v27 = vpop.permute.xlu0 %435 }
 0x1d9   : > { %v452_v31 = vcombine.low %v436_v27, %v442_v26 }
 0x1db   : > { %v459_v36 = vrot.slane %v452_v31, %v450_v30 }
 0x1dc   : > { %v439_v33 = vpop.permute.xlu0 %438 }
 0x1dd   : > { %v444_v34 = vcombine.low %v917_v14, %v439_v33 }
 0x1df   : > { %v451_v38 = vrot.slane %v444_v34, %v450_v30 }
 0x1e1   : > { %v460_v39 = vcombine.low %v451_v38, %v459_v36 }
 0x1e3   : > { %v467_v40 = vrot.slane %v460_v39, %v466_v37 }
 0x1e5   : > { %831 = vmatmul.mubr.msk.f32.vlgmr.msra.gmra.mrb[0].mxu1 %vm480_vm2, %v467_v40  ;;  %v557_v41 = vmul.f32 %v467_v40, %v467_v40  ;;  %469 = vst.msk [vmem:[%s1384_s20] sm:$0xf] %vm468_vm3, %v467_v40 }
 0x1e7   : > { %v558_v42 = vsel %vm468_vm3, %v557_v41, 0.0 }
 0x1e8   : > { %559 = vadd.xlane.f32.xlu0 %v558_v42 }
 0x1fe   : > { %476 = vbcast.lane.b32.xlu0 %v473_v54, 320 }
 0x217   : > { %v565_v58 = vpop.xlane.xlu1 %564 }
 0x218   : > { %v566_v60 = vadd.f32 1e-06, %v565_v58 }
 0x21a   : > { %v573_v61 = vrot.slane %v566_v60, %v572_v59 }
 0x275   : > { %v560_v55 = vpop.xlane.xlu0 %559 }
 0x276   : > { %v561_v62 = vadd.f32 1e-06, %v560_v55 }
 0x278   : > { %v579_v63 = vmul.f32 %v573_v61, %v561_v62 }
 0x279   : > { %v477_v56 = vpop.permute.xlu0 %476 }
 0x27a   : > { %479 = vst.msk [vmem:[%s333_s0] sm:$0xf] %vm478_vm6, %v477_v56  ;;  %922 = vrsqrt.f32 %v579_v63 }
 0x284   : > { %v923_v0 = vpop.eup %922 }
 0x2b8   : > { %v553_v1 = vpop.f32.mrb[0].mxu1 }
 0x2b9   : > { %v581_v2 = vmul.f32 %v923_v0, %v553_v1  ;;  %v832_v3 = vpop.f32.mrb[1].mxu1 }
 0x2bb   : > { %v582_v4 = vmul.f32 %v581_v2, %v477_v56 }
 0x2bd   : > { %v584_v5 = vsel %vm583_vm7, %v582_v4, -inf }
 0x2be   : > { %585 = vmax.xlane.f32.xlu1 %v584_v5 }
 0x34b   : > { %v586_v6 = vpop.xlane.xlu1 %585 }
 0x34c   : > { %v587_v7 = vsub.f32 %v582_v4, %v586_v6 }
 0x34e   : > { %v588_v8 = vmul.f32 1.442695, %v587_v7 }
 0x350   : > { %924 = vpow2.f32 %v588_v8 }
 0x35a   : > { %v925_v9 = vpop.eup %924 }
 0x35b   : > { %v590_v10 = vsel %vm583_vm7, %v925_v9, 0.0 }
 0x35c   : > { %591 = vadd.xlane.f32.xlu1 %v590_v10 }
 0x35d   : > { %1029 = shalt.err (!%p1026_p9)
}
 0x35e   : > { %s1030_s20 = scalar_lea.hbm %s1404_s13, 64  ;;  %s1034_s27 = scalar_lea.hbm %s1481_s4, 128 }
 0x35f   : > { %p1031_p12 = scmp.ne.s32.totalorder %s1404_s13, %s1030_s20  ;;  %p1035_p1 = scmp.lt.u32.totalorder %s1404_s13, %s1481_s4 }
 0x360   : > { %p1036_p10 = scmp.lt.u32.totalorder %s1034_s27, %s1030_s20  ;;  %p1038_p5 = scmp.lt.u32.totalorder %s1030_s20, %s1404_s13 }
 0x361   : > { %p1032_p6 = pnand %p1031_p12, %p1509_p13 }
 0x362   : > { %p1037_p2 = por %p1036_p10, %p1035_p1 }
 0x363   : > { %p1033_p3 = pneg %p1032_p6 }
 0x364   : > { %p1039_p11 = por %p1038_p5, %p1037_p2 }
 0x366   : > { %p1040_p0 = pnand %p1039_p11, %p1033_p3 }
 0x368   : > { %1043 = shalt.err (!%p1040_p0)
}
 0x369   : > { %847 = dma.vmem_to_hbm [thread:$0]  (%p1509_p13), %s620_s14, 64, %s1404_s13, %s597_s11  }
 0x36a   : > { %s329_s29 = scalar_lea.vmem [#allocation9], %s798_s15  ;;  %s1432_s7 = scalar_lea.hbm %s1483_s6, %s806_s23 }
 0x36b   : > { %s635_s9 = sshll.u32 %s329_s29, 4  ;;  %s606_s13 = scalar_lea.sflag [#allocation10], %s1355_s30  ;;  %s1434_s9 = int_to_ptr.vmem [resolvable:$true] %s635_s9 }
 0x36c   : > { %s1044_s14 = scalar_lea.vmem %s1434_s9, 64  ;;  %s1138_s15 = smov [#allocation9]  }
 0x36d   : > { %p1045_p8 = scmp.ne.s32.totalorder %s1434_s9, %s1044_s14  ;;  %s1048_s8 = sshll.u32 %s1138_s15, 4  ;;  %s1049_s8 = int_to_ptr.vmem [resolvable:$false] %s1048_s8 }
 0x36e   : > { %s1050_s11 = scalar_lea.vmem %s1049_s8, 128  ;;  %p1051_p9 = scmp.lt.s32.totalorder %s1434_s9, %s1049_s8 }
 0x36f   : > { %p1046_p4 = pnand %p1045_p8, %p1509_p13  ;;  %p1052_p12 = scmp.lt.s32.totalorder %s1050_s11, %s1044_s14 }
 0x371   : > { %p1047_p7 = pneg %p1046_p4  ;;  %p1053_p6 = por %p1052_p12, %p1051_p9 }
 0x373   : > { %p1054_p3 = pnand %p1053_p6, %p1047_p7 }
 0x3e9   : > { %v592_v11 = vpop.xlane.xlu1 %591 }
 0x3ea   : > { %926 = vrcp.f32 %v592_v11 }
 0x3f4   : > { %v927_v12 = vpop.eup %926 }
 0x3f5   : > { %v594_v13 = vmul.f32 %v927_v12, %v925_v9 }
 0x3f7   : > { %595 = vst.msk [vmem:[%s329_s29] sm:$0xf] %vm583_vm7, %v594_v13 }
 0x3f8   : > { %1057 = shalt.err (!%p1054_p3)
}
 0x3f9   : > { %s1058_s30 = scalar_lea.hbm %s1432_s7, 64  ;;  %s1062_s20 = scalar_lea.hbm %s1483_s6, 128 }
 0x3fa   : > { %p1059_p1 = scmp.ne.s32.totalorder %s1432_s7, %s1058_s30  ;;  %p1063_p5 = scmp.lt.u32.totalorder %s1432_s7, %s1483_s6 }
 0x3fb   : > { %p1064_p11 = scmp.lt.u32.totalorder %s1062_s20, %s1058_s30  ;;  %p1066_p8 = scmp.lt.u32.totalorder %s1058_s30, %s1432_s7 }
 0x3fc   : > { %p1060_p10 = pnand %p1059_p1, %p1509_p13 }
 0x3fd   : > { %p1065_p0 = por %p1064_p11, %p1063_p5 }
 0x3fe   : > { %p1061_p2 = pneg %p1060_p10 }
 0x3ff   : > { %p1067_p4 = por %p1066_p8, %p1065_p0 }
 0x401   : > { %p1068_p7 = pnand %p1067_p4, %p1061_p2 }
 0x403   : > { %1071 = shalt.err (!%p1068_p7)
}
 0x404   : > { %848 = dma.vmem_to_hbm [thread:$0]  (%p1509_p13), %s1434_s9, 64, %s1432_s7, %s606_s13  }
 0x405 PF: > { %s647_s27 = sand.u32 1, %s1110_s21   ;;  %p1510_p9 = scmp.ne.s32.totalorder %s1499_s12, 0 }
 0x406   : > { %p1511_p12 = scmp.ge.s32.totalorder %s1122_s24, 2  ;;  %s648_s28 = scalar_lea.sflag [#allocation4], %s647_s27 }
 0x408   : > { %p863_p6 = pnand %p1511_p12, %p1510_p9 }
 0x40a   : > { %1101 = dma.done.wait (!%p863_p6), %s648_s28, 64  }
 0x40b   : > { %1103 = vsyncadd (!%p863_p6), %s648_s28, 4294967232  ;;  %s664_s0 = scalar_lea.sflag [#allocation10], %s647_s27 }
 0x40c   : > { %1105 = dma.done.wait (!%p863_p6), %s664_s0, 64  }
 0x40d   : > { %1107 = vsyncadd (!%p863_p6), %s664_s0, 4294967232  ;;  %s1512_s10 = sld [smem:[#allocation16_spill]]  ;;  %s1513_s23 = sld [smem:[#allocation17_spill]] }
 0x40e   : > { %p24_p13 = scmp.ge.s32.totalorder %s1195_s25, 4   ;;  %s1514_s21 = smov %s1114_s22 }
 0x40f   : > { %s1516_s24 = smov %s1195_s25 }
 0x410   :  { %26 = sbr.rel (!%p24_p13) target bundleno = 10 (0xa), region = 125 }
 0x413   : > { %s1515_s22 = smov %s1512_s10 }
 0x417   :  { %669 = vsyncpa [#allocation3], 1 }
 0x418   :  { %671 = vsyncpa [#allocation3 + $0x1], 1 }
 0x419   :  { %672 = vsyncpa [#allocation6], 1 }
 0x41a   :  { %673 = vsyncpa [#allocation4], 1 }
 0x41b   :  { %675 = vsyncpa [#allocation4 + $0x1], 1 }
 0x41c   :  { %676 = vsyncpa [#allocation10], 1 }
 0x41d   :  { %678 = vsyncpa [#allocation10 + $0x1], 1 }

</bundles_post_ra>
